<compile_context>
chip_gen: v5e
topology: v5e:2x2
jax: 0.10.0
libtpu: 0.0.40
codegen_flags: <defaults>
</compile_context>

<pallas_src>
import functools

import jax
import jax.numpy as jnp
from jax.experimental import pallas as pl
from jax.experimental.pallas import tpu as pltpu


# ----------------------------- Pallas kernel ---------------------------------
def _complex_conv_kernel(pcat_ref, wblk_ref, bias_ref, out_ref):
    # pcat_ref : (1, n_off, TILE_M, Kc)  bf16   [real patches | imag patches | 0-pad]
    # wblk_ref : (Kc, 2*Cp)              bf16   [[Wre, Wim], [-Wim, Wre], 0-pad]
    # bias_ref : (1, 2*Cp)               f32    [b_re-b_im | b_re+b_im] (0-padded)
    # out_ref  : (1, TILE_M, 2*Cp)       f32    pooled [real | imag] outputs
    n_off = pcat_ref.shape[1]

    w = wblk_ref[...]                                   # keep weight in vregs/VMEM once
    # Unrolled per-pool-offset dots with a running max (f32 accumulation on MXU).
    acc = jnp.dot(pcat_ref[0, 0], w, preferred_element_type=jnp.float32)
    for off in range(1, n_off):                         # static unroll (n_off is 1 or 4)
        y = jnp.dot(pcat_ref[0, off], w, preferred_element_type=jnp.float32)
        acc = jnp.maximum(acc, y)
    # Bias + ReLU once, after the pool max (bias is offset-invariant, ReLU monotone).
    out_ref[0] = jnp.maximum(acc + bias_ref[...], 0.0)


# ------------------------------ wrapper glue ----------------------------------
def _round_up(x, m):
    return ((x + m - 1) // m) * m


def _pad_axis(a, axis, target):
    pad = [(0, 0)] * a.ndim
    pad[axis] = (0, target - a.shape[axis])
    return jnp.pad(a, pad)


def _im2col(xpad, h_out, w_out, kh, kw):
    # xpad: (B, C, Hp, Wp) -> (B, K, Ho, Wo), K index = c*kh*kw + di*kw + dj
    b, c, _, _ = xpad.shape
    cols = []
    for di in range(kh):
        for dj in range(kw):
            cols.append(xpad[:, :, di:di + h_out, dj:dj + w_out])
    p = jnp.stack(cols, axis=2)                      # (B, C, kh*kw, Ho, Wo)
    return p.reshape(b, c * kh * kw, h_out, w_out)


def _pool_offsets(p, apply_pool):
    # p: (B, K, Ho, Wo) -> (B, n_off, M, K)
    b, k, ho, wo = p.shape
    if apply_pool:
        assert ho % 2 == 0 and wo % 2 == 0, "pooling requires even conv output"
        q = p.reshape(b, k, ho // 2, 2, wo // 2, 2)
        q = jnp.transpose(q, (0, 3, 5, 2, 4, 1))     # (B, 2, 2, H', W', K)
        return q.reshape(b, 4, (ho // 2) * (wo // 2), k)
    q = jnp.transpose(p, (0, 2, 3, 1))               # (B, Ho, Wo, K)
    return q.reshape(b, 1, ho * wo, k)


def _vmem_capacity_bytes():
    # Generation-aware VMEM capacity (128 MiB on v5e/v6e, 64 MiB per core on v7x).
    try:
        return int(pltpu.get_tpu_info().vmem_capacity_bytes)
    except Exception:
        return 64 << 20          # conservative fallback (v7x per-core VMEM)


def _choose_tiling(bsz, m, n_off, kc, two_cp, vmem_cap):
    """Pick (tile_m, n_tiles) from a VMEM budget with balanced (low-waste) tiles."""
    budget = int(vmem_cap * 0.6)                     # pipeline-buffer budget
    fixed = 2 * (kc * two_cp * 2 + two_cp * 4)       # weight + bias, double buffered
    per_row = (2 * n_off * kc * 2                    # pcat block (bf16), double buffered
               + 2 * two_cp * 4                      # output block (f32), double buffered
               + 2 * two_cp * 4)                     # in-kernel f32 acc/dot intermediates
    cap_rows = (budget - fixed) // per_row if budget > fixed else 8
    cap_rows = max(8, min(2048, (cap_rows // 8) * 8))
    # balanced tiles to avoid ~2x M-padding waste on unlucky spatial sizes
    min_tiles = 2 if (bsz == 1 and m > 8) else 1     # keep both v7x TensorCores busy
    n_tiles = max(-(-m // cap_rows), min_tiles)
    tile_m = _round_up(-(-m // n_tiles), 8)
    return tile_m, n_tiles


@functools.partial(jax.jit, static_argnames=("padding", "apply_pool"))
def complex_conv(x, w_re, b_re, w_im, b_im, *, padding=0, apply_pool=True):
    """x: (B, 2, Cin, H, W) NCHW-style with complex axis at dim 1 (stride=1 conv)."""
    bsz, two, c_in, h, w = x.shape
    assert two == 2
    c_out, _, kh, kw = w_re.shape
    ho = h + 2 * padding - kh + 1
    wo = w + 2 * padding - kw + 1
    k = c_in * kh * kw

    # ----- patches: cast to bf16 BEFORE the kh*kw expansion (halves HBM traffic) ----
    padcfg = ((0, 0), (0, 0), (padding, padding), (padding, padding))
    xr = jnp.pad(x[:, 0], padcfg).astype(jnp.bfloat16)
    xi = jnp.pad(x[:, 1], padcfg).astype(jnp.bfloat16)
    pre = _pool_offsets(_im2col(xr, ho, wo, kh, kw), apply_pool)   # (B, n_off, M, K) bf16
    pim = _pool_offsets(_im2col(xi, ho, wo, kh, kw), apply_pool)
    n_off, m = pre.shape[1], pre.shape[2]

    kc = _round_up(2 * k, 128)                     # padded fused-K (lane width)
    cp = _round_up(c_out, 64)                      # 2*cp is a multiple of 128
    vmem_cap = _vmem_capacity_bytes()
    tile_m, num_mt = _choose_tiling(bsz, m, n_off, kc, 2 * cp, vmem_cap)
    mp = tile_m * num_mt

    pcat = jnp.concatenate([pre, pim], axis=-1)    # (B, n_off, M, 2K) bf16
    pcat = _pad_axis(pcat, 3, kc)
    pcat = _pad_axis(pcat, 2, mp)

    # ----- block weight [[Wre, Wim], [-Wim, Wre]] and fused bias -------------
    wre_m = w_re.reshape(c_out, k).T               # (K, C)
    wim_m = w_im.reshape(c_out, k).T
    wre_p = _pad_axis(wre_m, 1, cp)                # (K, Cp)
    wim_p = _pad_axis(wim_m, 1, cp)
    top = jnp.concatenate([wre_p, wim_p], axis=1)        # multiplies real patches
    bot = jnp.concatenate([-wim_p, wre_p], axis=1)       # multiplies imag patches
    wblk = jnp.concatenate([top, bot], axis=0)           # (2K, 2Cp)
    wblk = _pad_axis(wblk, 0, kc).astype(jnp.bfloat16)   # (Kc, 2Cp)

    b_real = _pad_axis(b_re - b_im, 0, cp)               # bias of real channel block
    b_imag = _pad_axis(b_re + b_im, 0, cp)               # bias of imag channel block
    bias_blk = jnp.concatenate([b_real, b_imag]).reshape(1, 2 * cp).astype(jnp.float32)

    # ----- pallas call --------------------------------------------------------
    cost = pl.CostEstimate(
        flops=2 * bsz * n_off * mp * kc * (2 * cp),
        transcendentals=0,
        bytes_accessed=(bsz * n_off * mp * kc * 2          # bf16 patches
                        + kc * 2 * cp * 2                  # bf16 block weight
                        + 2 * cp * 4                       # f32 bias
                        + bsz * mp * 2 * cp * 4))          # f32 output

    out = pl.pallas_call(
        _complex_conv_kernel,
        grid=(bsz, num_mt),
        in_specs=[
            pl.BlockSpec((1, n_off, tile_m, kc), lambda b, t: (b, 0, t, 0)),
            pl.BlockSpec((kc, 2 * cp), lambda b, t: (0, 0)),
            pl.BlockSpec((1, 2 * cp), lambda b, t: (0, 0)),
        ],
        out_specs=pl.BlockSpec((1, tile_m, 2 * cp), lambda b, t: (b, t, 0)),
        out_shape=jax.ShapeDtypeStruct((bsz, mp, 2 * cp), jnp.float32),
        compiler_params=pltpu.CompilerParams(
            dimension_semantics=("parallel", "parallel"),
            vmem_limit_bytes=int(vmem_cap * 0.75)),
        cost_estimate=cost,
    )(pcat, wblk, bias_blk)

    # ----- unpad / reshape back to (B, 2, Cout, Hp, Wp) -----------------------
    # TODO(synk): if the consumer can take channel-last, skip this transpose pass.
    real = out[:, :m, :c_out]
    imag = out[:, :m, cp:cp + c_out]
    hp, wp = (ho // 2, wo // 2) if apply_pool else (ho, wo)
    real = real.reshape(bsz, hp, wp, c_out).transpose(0, 3, 1, 2)
    imag = imag.reshape(bsz, hp, wp, c_out).transpose(0, 3, 1, 2)
    return jnp.stack((real, imag), axis=1)           # (B, 2, Cout, Hp, Wp)


# --------------------------- pure-JAX reference --------------------------------
def _conv2d_ref(x, w, b, padding):
    y = jax.lax.conv_general_dilated(
        x, w, window_strides=(1, 1),
        padding=[(padding, padding), (padding, padding)],
        dimension_numbers=("NCHW", "OIHW", "NCHW"))
    return y + b[None, :, None, None]


def complex_conv_ref(x, w_re, b_re, w_im, b_im, *, padding=0, apply_pool=True):
    xr, xi = x[:, 0], x[:, 1]
    real = jax.nn.relu(_conv2d_ref(xr, w_re, b_re, padding)
                       - _conv2d_ref(xi, w_im, b_im, padding))
    imag = jax.nn.relu(_conv2d_ref(xi, w_re, b_re, padding)
                       + _conv2d_ref(xr, w_im, b_im, padding))
    if apply_pool:
        def pool(z):
            return jax.lax.reduce_window(z, -jnp.inf, jax.lax.max,
                                         (1, 1, 2, 2), (1, 1, 2, 2), "VALID")
        real, imag = pool(real), pool(imag)
    return jnp.stack((real, imag), axis=1)


# ----------------------------------- main --------------------------------------
if __name__ == "__main__":
    key = jax.random.PRNGKey(0)
    B, C_IN, C_OUT, H, W, KSZ, PAD = 2, 4, 8, 16, 16, 3, 1

    k1, k2, k3, k4, k5 = jax.random.split(key, 5)
    x = jax.random.normal(k1, (B, 2, C_IN, H, W), jnp.float32)

    fan_in = C_IN * KSZ * KSZ
    bound = fan_in ** -0.5   # deterministic, PyTorch-like uniform init
    w_re = jax.random.uniform(k2, (C_OUT, C_IN, KSZ, KSZ), jnp.float32, -bound, bound)
    w_im = jax.random.uniform(k3, (C_OUT, C_IN, KSZ, KSZ), jnp.float32, -bound, bound)
    b_re = jax.random.uniform(k4, (C_OUT,), jnp.float32, -bound, bound)
    b_im = jax.random.uniform(k5, (C_OUT,), jnp.float32, -bound, bound)

    # --- pooled path (the default module config) ---
    out = complex_conv(x, w_re, b_re, w_im, b_im, padding=PAD, apply_pool=True)
    out = jax.block_until_ready(out)
    ref = complex_conv_ref(x, w_re, b_re, w_im, b_im, padding=PAD, apply_pool=True)
    assert out.shape == (B, 2, C_OUT, H // 2, W // 2), out.shape
    # bf16 MXU inputs (f32 accumulate) -> slightly looser tolerance than pure f32.
    if not jnp.allclose(out, ref, atol=5e-2, rtol=5e-2):
        raise AssertionError("Pallas ComplexConv (pooled) does not match reference")

    # --- no-pool path ---
    out_np = complex_conv(x, w_re, b_re, w_im, b_im, padding=PAD, apply_pool=False)
    out_np = jax.block_until_ready(out_np)
    ref_np = complex_conv_ref(x, w_re, b_re, w_im, b_im, padding=PAD, apply_pool=False)
    assert out_np.shape == (B, 2, C_OUT, H, W), out_np.shape
    if not jnp.allclose(out_np, ref_np, atol=5e-2, rtol=5e-2):
        raise AssertionError("Pallas ComplexConv (no pool) does not match reference")

    print("KERNEL_OK")
</pallas_src>

<mosaic_0001>
module attributes {stable_mosaic.version = 11 : i64} {
  func.func @_complex_conv_kernel(%arg0: i32, %arg1: i32, %arg2: memref<1x4x64x128xbf16, #tpu.memory_space<vmem>>, %arg3: memref<128x128xbf16, #tpu.memory_space<vmem>>, %arg4: memref<1x128xf32, #tpu.memory_space<vmem>>, %arg5: memref<1x64x128xf32, #tpu.memory_space<vmem>>) attributes {dimension_semantics = [#tpu.dimension_semantics<parallel>, #tpu.dimension_semantics<parallel>], iteration_bounds = array<i64: 2, 1>, scalar_prefetch = 0 : i64, scratch_operands = 0 : i64, tpu.core_type = #tpu.core_type<tc>, window_params = [{transform_indices = @transform_0, window_bounds = array<i64: 1, 4, 64, 128>}, {pipeline_mode = #tpu.pipeline_mode<synchronous>, transform_indices = @transform_1, window_bounds = array<i64: 128, 128>}, {pipeline_mode = #tpu.pipeline_mode<synchronous>, transform_indices = @transform_2, window_bounds = array<i64: 1, 128>}, {transform_indices = @transform_3, window_bounds = array<i64: 1, 64, 128>}]} {
    %c0 = arith.constant 0 : index
    %c0_0 = arith.constant 0 : index
    %0 = vector.load %arg3[%c0, %c0_0] : memref<128x128xbf16, #tpu.memory_space<vmem>>, vector<128x128xbf16>
    %c0_1 = arith.constant 0 : index
    %c0_2 = arith.constant 0 : index
    %c0_3 = arith.constant 0 : index
    %c0_4 = arith.constant 0 : index
    %1 = vector.load %arg2[%c0_1, %c0_2, %c0_3, %c0_4] : memref<1x4x64x128xbf16, #tpu.memory_space<vmem>>, vector<1x1x64x128xbf16>
    %2 = vector.shape_cast %1 : vector<1x1x64x128xbf16> to vector<64x128xbf16>
    %cst = arith.constant dense<0.000000e+00> : vector<64x128xf32>
    %3 = tpu.matmul %2, %0, %cst {dimension_numbers = #tpu.dot_dimension_numbers<[1], [0], [0], [1], [0, 0, 1, 1], [], []>} : vector<64x128xbf16>, vector<128x128xbf16>, vector<64x128xf32> -> vector<64x128xf32>
    %c0_5 = arith.constant 0 : index
    %c1 = arith.constant 1 : index
    %c0_6 = arith.constant 0 : index
    %c0_7 = arith.constant 0 : index
    %4 = vector.load %arg2[%c0_5, %c1, %c0_6, %c0_7] : memref<1x4x64x128xbf16, #tpu.memory_space<vmem>>, vector<1x1x64x128xbf16>
    %5 = vector.shape_cast %4 : vector<1x1x64x128xbf16> to vector<64x128xbf16>
    %cst_8 = arith.constant dense<0.000000e+00> : vector<64x128xf32>
    %6 = tpu.matmul %5, %0, %cst_8 {dimension_numbers = #tpu.dot_dimension_numbers<[1], [0], [0], [1], [0, 0, 1, 1], [], []>} : vector<64x128xbf16>, vector<128x128xbf16>, vector<64x128xf32> -> vector<64x128xf32>
    %7 = arith.maximumf %3, %6 : vector<64x128xf32>
    %c0_9 = arith.constant 0 : index
    %c2 = arith.constant 2 : index
    %c0_10 = arith.constant 0 : index
    %c0_11 = arith.constant 0 : index
    %8 = vector.load %arg2[%c0_9, %c2, %c0_10, %c0_11] : memref<1x4x64x128xbf16, #tpu.memory_space<vmem>>, vector<1x1x64x128xbf16>
    %9 = vector.shape_cast %8 : vector<1x1x64x128xbf16> to vector<64x128xbf16>
    %cst_12 = arith.constant dense<0.000000e+00> : vector<64x128xf32>
    %10 = tpu.matmul %9, %0, %cst_12 {dimension_numbers = #tpu.dot_dimension_numbers<[1], [0], [0], [1], [0, 0, 1, 1], [], []>} : vector<64x128xbf16>, vector<128x128xbf16>, vector<64x128xf32> -> vector<64x128xf32>
    %11 = arith.maximumf %7, %10 : vector<64x128xf32>
    %c0_13 = arith.constant 0 : index
    %c3 = arith.constant 3 : index
    %c0_14 = arith.constant 0 : index
    %c0_15 = arith.constant 0 : index
    %12 = vector.load %arg2[%c0_13, %c3, %c0_14, %c0_15] : memref<1x4x64x128xbf16, #tpu.memory_space<vmem>>, vector<1x1x64x128xbf16>
    %13 = vector.shape_cast %12 : vector<1x1x64x128xbf16> to vector<64x128xbf16>
    %cst_16 = arith.constant dense<0.000000e+00> : vector<64x128xf32>
    %14 = tpu.matmul %13, %0, %cst_16 {dimension_numbers = #tpu.dot_dimension_numbers<[1], [0], [0], [1], [0, 0, 1, 1], [], []>} : vector<64x128xbf16>, vector<128x128xbf16>, vector<64x128xf32> -> vector<64x128xf32>
    %15 = arith.maximumf %11, %14 : vector<64x128xf32>
    %c0_17 = arith.constant 0 : index
    %c0_18 = arith.constant 0 : index
    %16 = vector.load %arg4[%c0_17, %c0_18] : memref<1x128xf32, #tpu.memory_space<vmem>>, vector<1x128xf32>
    %17 = vector.broadcast %16 : vector<1x128xf32> to vector<64x128xf32>
    %18 = arith.addf %15, %17 : vector<64x128xf32>
    %cst_19 = arith.constant 0.000000e+00 : f32
    %19 = vector.broadcast %cst_19 : f32 to vector<64x128xf32>
    %20 = arith.maximumf %18, %19 : vector<64x128xf32>
    %c0_20 = arith.constant 0 : index
    %c0_21 = arith.constant 0 : index
    %c0_22 = arith.constant 0 : index
    %21 = vector.load %arg5[%c0_20, %c0_21, %c0_22] : memref<1x64x128xf32, #tpu.memory_space<vmem>>, vector<1x64x128xf32>
    %22 = vector.shape_cast %21 : vector<1x64x128xf32> to vector<64x128xf32>
    %23 = vector.shape_cast %20 : vector<64x128xf32> to vector<1x64x128xf32>
    tpu.vector_store %arg5[%c0_20, %c0_21, %c0_22], %23 {strides = array<i32>} : memref<1x64x128xf32, #tpu.memory_space<vmem>>, vector<1x64x128xf32>,
    return
  }
  func.func @transform_0(%arg0: i32, %arg1: i32) -> (i32, i32, i32, i32) {
    %c0_i32 = arith.constant 0 : i32
    %c0_i32_0 = arith.constant 0 : i32
    %c0_i32_1 = arith.constant 0 : i32
    return %arg0, %c0_i32, %arg1, %c0_i32_0 : i32, i32, i32, i32
  }
  func.func @transform_1(%arg0: i32, %arg1: i32) -> (i32, i32) {
    %c0_i32 = arith.constant 0 : i32
    %c0_i32_0 = arith.constant 0 : i32
    %c0_i32_1 = arith.constant 0 : i32
    return %c0_i32, %c0_i32_0 : i32, i32
  }
  func.func @transform_2(%arg0: i32, %arg1: i32) -> (i32, i32) {
    %c0_i32 = arith.constant 0 : i32
    %c0_i32_0 = arith.constant 0 : i32
    %c0_i32_1 = arith.constant 0 : i32
    return %c0_i32, %c0_i32_0 : i32, i32
  }
  func.func @transform_3(%arg0: i32, %arg1: i32) -> (i32, i32, i32) {
    %c0_i32 = arith.constant 0 : i32
    %c0_i32_0 = arith.constant 0 : i32
    return %arg0, %arg1, %c0_i32 : i32, i32, i32
  }
}

</mosaic_0001>

<bundles_post_ra>
// kernel: complex_conv.1
= control target key start
LH: loop header
LB: loop body
LE: loop exit
PB: predicated region body
PF: predicated region fallthrough
CT: control target
= control target key end

     0   :  { %s886_s12 = smov 0   ;;  %s888_s13 = smov 0   ;;  %s992_s0 = inlined_call_operand.vmem [shape: bf16[2,4,64,128], index: 0, kind: input, shape index: {}]   ;;  %s993_s1 = inlined_call_operand.vmem [shape: bf16[128,128], index: 1, kind: input, shape index: {}]   ;;  %s994_s2 = inlined_call_operand.vmem [shape: f32[1,128], index: 2, kind: input, shape index: {}]   ;;  %s995_s3 = inlined_call_operand.vmem [shape: f32[2,64,128], index: 3, kind: output, shape index: {}]  }
   0x1   :  { %s890_s14 = smov 0  }
   0x2 LB: > { %s25_s15 = sadd.s32 1, %s860_s13  ;;  %p664_p0 = scmp.ge.s32.totalorder %s864_s14, 1  ;;  %s864_s14 = sphi %s890_s14, %s13_s14   ;;  %s860_s13 = sphi %s888_s13, %s997_s13   ;;  %s856_s12 = sphi %s886_s12, %s996_s12  }
   0x3   : > { %p27_p1 = scmp.ge.s32.totalorder %s25_s15, 2  ;;  %p158_p2 = scmp.lt.s32.totalorder %s864_s14, 3 }
   0x5   : > { %s999_s15 = smov (%p27_p1, %s25_s15), 0  ;;  %p159_p3 = pnand %p664_p0, %p158_p2 }
   0x6   : > { %p191_p4 = scmp.lt.s32.totalorder (!%p159_p3), %s856_s12, 1 }
   0x7   : > { %162 = sbr.rel (%p159_p3) target bundleno = 242 (0xf2), region = 32 }
   0xc   : > { %v800_v0 = vld [vmem:[%s993_s1 + $0x38] sm:$0xff]  ;;  %v799_v1 = vld [vmem:[%s993_s1 + $0x30] sm:$0xff]  ;;  %v798_v2 = vld [vmem:[%s993_s1 + $0x28] sm:$0xff]  ;;  %s1001_s12 = smov (!%p191_p4, %s856_s12), 1 }
   0xd   : > { %306 = vmatpush.bf16.msra.mxu0 %v800_v0  ;;  %368 = vmatpush.bf16.msra.mxu1 %v800_v0  ;;  %v797_v3 = vld [vmem:[%s993_s1 + $0x20] sm:$0xff]  ;;  %v796_v4 = vld [vmem:[%s993_s1 + $0x18] sm:$0xff]  ;;  %v795_v5 = vld [vmem:[%s993_s1 + $0x10] sm:$0xff]  ;;  %s791_s30 = sshll.u32 %s1001_s12, 7  ;;  %s792_s11 = sshll.u32 %s1001_s12, 6 }
   0xe   : > { %438 = vmatpush.bf16.msra.mxu2 %v800_v0  ;;  %508 = vmatpush.bf16.msra.mxu3 %v800_v0  ;;  %v794_v6 = vld [vmem:[%s993_s1 + $0x8] sm:$0xff]  ;;  %v793_v7 = vld [vmem:[%s993_s1] sm:$0xff]  ;;  %s938_s8 = scalar_lea.vmem %s992_s0, %s791_s30  ;;  %s966_s18 = scalar_lea.vmem %s995_s3, %s792_s11 }
   0xf   : > { %v801_v8 = vld [vmem:[%s938_s8] sm:$0xff]  ;;  %v802_v12 = vld [vmem:[%s938_s8 + $0x8] sm:$0xff]  ;;  %v803_v16 = vld [vmem:[%s938_s8 + $0x10] sm:$0xff] }
  0x10   : > { %v805_v9 = vld [vmem:[%s938_s8 + $0x20] sm:$0xff]  ;;  %v806_v13 = vld [vmem:[%s938_s8 + $0x28] sm:$0xff]  ;;  %v807_v17 = vld [vmem:[%s938_s8 + $0x30] sm:$0xff] }
  0x11   : > { %307 = vmatpush.bf16.msra.mxu0 %v799_v1  ;;  %369 = vmatpush.bf16.msra.mxu1 %v799_v1  ;;  %v809_v10 = vld [vmem:[%s938_s8 + $0x40] sm:$0xff]  ;;  %v810_v14 = vld [vmem:[%s938_s8 + $0x48] sm:$0xff]  ;;  %v811_v18 = vld [vmem:[%s938_s8 + $0x50] sm:$0xff] }
  0x12   : > { %439 = vmatpush.bf16.msra.mxu2 %v799_v1  ;;  %509 = vmatpush.bf16.msra.mxu3 %v799_v1  ;;  %v813_v11 = vld [vmem:[%s938_s8 + $0x60] sm:$0xff]  ;;  %v814_v15 = vld [vmem:[%s938_s8 + $0x68] sm:$0xff]  ;;  %v815_v19 = vld [vmem:[%s938_s8 + $0x70] sm:$0xff] }
  0x13   : > { %v804_v20 = vld [vmem:[%s938_s8 + $0x18] sm:$0xff]  ;;  %v959_v30 = vld [vmem:[%s994_s2] ss:$0 sm:$0xff] }
  0x14   : > { %v808_v21 = vld [vmem:[%s938_s8 + $0x38] sm:$0xff] }
  0x15   : > { %308 = vmatpush.bf16.msra.mxu0 %v798_v2  ;;  %370 = vmatpush.bf16.msra.mxu1 %v798_v2  ;;  %v812_v22 = vld [vmem:[%s938_s8 + $0x58] sm:$0xff] }
  0x16   : > { %440 = vmatpush.bf16.msra.mxu2 %v798_v2  ;;  %510 = vmatpush.bf16.msra.mxu3 %v798_v2  ;;  %v816_v23 = vld [vmem:[%s938_s8 + $0x78] sm:$0xff] }
  0x19   : > { %309 = vmatpush.bf16.msra.mxu0 %v797_v3  ;;  %371 = vmatpush.bf16.msra.mxu1 %v797_v3 }
  0x1a   : > { %441 = vmatpush.bf16.msra.mxu2 %v797_v3  ;;  %511 = vmatpush.bf16.msra.mxu3 %v797_v3 }
  0x1d   : > { %310 = vmatpush.bf16.msra.mxu0 %v796_v4  ;;  %372 = vmatpush.bf16.msra.mxu1 %v796_v4 }
  0x1e   : > { %442 = vmatpush.bf16.msra.mxu2 %v796_v4  ;;  %512 = vmatpush.bf16.msra.mxu3 %v796_v4 }
  0x21   : > { %311 = vmatpush.bf16.msra.mxu0 %v795_v5  ;;  %373 = vmatpush.bf16.msra.mxu1 %v795_v5 }
  0x22   : > { %443 = vmatpush.bf16.msra.mxu2 %v795_v5  ;;  %513 = vmatpush.bf16.msra.mxu3 %v795_v5 }
  0x25   : > { %312 = vmatpush.bf16.msra.mxu0 %v794_v6  ;;  %374 = vmatpush.bf16.msra.mxu1 %v794_v6 }
  0x26   : > { %444 = vmatpush.bf16.msra.mxu2 %v794_v6  ;;  %514 = vmatpush.bf16.msra.mxu3 %v794_v6 }
  0x29   : > { %313 = vmatpush.bf16.msra.mxu0 %v793_v7  ;;  %375 = vmatpush.bf16.msra.mxu1 %v793_v7 }
  0x2a   : > { %445 = vmatpush.bf16.msra.mxu2 %v793_v7  ;;  %515 = vmatpush.bf16.msra.mxu3 %v793_v7 }
  0x2c   : > { %314 = vmatmul.bf16.vlgmr.msra.gmra.mxu0 %v801_v8  ;;  %376 = vmatmul.bf16.vlgmr.msra.gmra.mxu1 %v805_v9 }
  0x2d   : > { %446 = vmatmul.bf16.vlgmr.msra.gmra.mxu2 %v809_v10  ;;  %516 = vmatmul.bf16.vlgmr.msra.gmra.mxu3 %v813_v11 }
  0x3c   : > { %319 = vmatmul.bf16.gmra.mxu0 %v802_v12  ;;  %381 = vmatmul.bf16.gmra.mxu1 %v806_v13 }
  0x3d   : > { %451 = vmatmul.bf16.gmra.mxu2 %v810_v14  ;;  %521 = vmatmul.bf16.gmra.mxu3 %v814_v15 }
  0x4c   : > { %324 = vmatmul.bf16.gmra.mxu0 %v803_v16  ;;  %386 = vmatmul.bf16.gmra.mxu1 %v807_v17 }
  0x4d   : > { %456 = vmatmul.bf16.gmra.mxu2 %v811_v18  ;;  %526 = vmatmul.bf16.gmra.mxu3 %v815_v19 }
  0x5c   : > { %329 = vmatmul.bf16.gmra.mxu0 %v804_v20  ;;  %391 = vmatmul.bf16.gmra.mxu1 %v808_v21 }
  0x5d   : > { %461 = vmatmul.bf16.gmra.mxu2 %v812_v22  ;;  %531 = vmatmul.bf16.gmra.mxu3 %v816_v23 }
  0xa9   : > { %v315_v24 = vpop.f32.mrf.mxu0  ;;  %v377_v25 = vpop.f32.mrf.mxu1 }
  0xaa   : > { %v397_v26 = vmax.f32 %v315_v24, %v377_v25 }
  0xb0   : > { %v447_v27 = vpop.f32.mrf.mxu2  ;;  %v517_v28 = vpop.f32.mrf.mxu3 }
  0xb1   : > { %v467_v29 = vmax.f32 %v397_v26, %v447_v27  ;;  %v317_v31 = vpop.f32.mrf.mxu0  ;;  %v379_v32 = vpop.f32.mrf.mxu1 }
  0xb2   : > { %v398_v36 = vmax.f32 %v317_v31, %v379_v32 }
  0xb3   : > { %v537_v33 = vmax.f32 %v467_v29, %v517_v28 }
  0xb5   : > { %v549_v34 = vadd.f32 %v959_v30, %v537_v33 }
  0xb7   : > { %v557_v35 = vmax.f32 %v549_v34, 0.0 }
  0xb8   : > { %v449_v37 = vpop.f32.mrf.mxu2  ;;  %v519_v38 = vpop.f32.mrf.mxu3 }
  0xb9   : > { %565 = vst [vmem:[%s966_s18] sm:$0xff] %v557_v35  ;;  %v468_v39 = vmax.f32 %v398_v36, %v449_v37  ;;  %v320_v40 = vpop.f32.mrf.mxu0  ;;  %v382_v41 = vpop.f32.mrf.mxu1 }
  0xba   : > { %v399_v44 = vmax.f32 %v320_v40, %v382_v41 }
  0xbb   : > { %v538_v42 = vmax.f32 %v468_v39, %v519_v38 }
  0xbd   : > { %v550_v43 = vadd.f32 %v959_v30, %v538_v42 }
  0xbf   : > { %v558_v45 = vmax.f32 %v550_v43, 0.0 }
  0xc0   : > { %v452_v46 = vpop.f32.mrf.mxu2  ;;  %v522_v47 = vpop.f32.mrf.mxu3 }
  0xc1   : > { %566 = vst [vmem:[%s966_s18 + $0x8] sm:$0xff] %v558_v45  ;;  %v469_v48 = vmax.f32 %v399_v44, %v452_v46  ;;  %v322_v49 = vpop.f32.mrf.mxu0  ;;  %v384_v50 = vpop.f32.mrf.mxu1 }
  0xc2   : > { %v400_v54 = vmax.f32 %v322_v49, %v384_v50 }
  0xc3   : > { %v539_v51 = vmax.f32 %v469_v48, %v522_v47 }
  0xc5   : > { %v551_v52 = vadd.f32 %v959_v30, %v539_v51 }
  0xc7   : > { %v559_v53 = vmax.f32 %v551_v52, 0.0 }
  0xc8   : > { %v454_v55 = vpop.f32.mrf.mxu2  ;;  %v524_v56 = vpop.f32.mrf.mxu3 }
  0xc9   : > { %567 = vst [vmem:[%s966_s18 + $0x10] sm:$0xff] %v559_v53  ;;  %v470_v57 = vmax.f32 %v400_v54, %v454_v55  ;;  %v325_v58 = vpop.f32.mrf.mxu0  ;;  %v387_v59 = vpop.f32.mrf.mxu1 }
  0xca   : > { %v401_v62 = vmax.f32 %v325_v58, %v387_v59 }
  0xcb   : > { %v540_v60 = vmax.f32 %v470_v57, %v524_v56 }
  0xcd   : > { %v552_v61 = vadd.f32 %v959_v30, %v540_v60 }
  0xcf   : > { %v560_v63 = vmax.f32 %v552_v61, 0.0 }
  0xd0   : > { %v457_v0 = vpop.f32.mrf.mxu2  ;;  %v527_v1 = vpop.f32.mrf.mxu3 }
  0xd1   : > { %568 = vst [vmem:[%s966_s18 + $0x18] sm:$0xff] %v560_v63  ;;  %v471_v2 = vmax.f32 %v401_v62, %v457_v0  ;;  %v327_v3 = vpop.f32.mrf.mxu0  ;;  %v389_v4 = vpop.f32.mrf.mxu1 }
  0xd2   : > { %v402_v8 = vmax.f32 %v327_v3, %v389_v4 }
  0xd3   : > { %v541_v5 = vmax.f32 %v471_v2, %v527_v1 }
  0xd5   : > { %v553_v6 = vadd.f32 %v959_v30, %v541_v5 }
  0xd7   : > { %v561_v7 = vmax.f32 %v553_v6, 0.0 }
  0xd8   : > { %v459_v9 = vpop.f32.mrf.mxu2  ;;  %v529_v10 = vpop.f32.mrf.mxu3 }
  0xd9   : > { %569 = vst [vmem:[%s966_s18 + $0x20] sm:$0xff] %v561_v7  ;;  %v472_v11 = vmax.f32 %v402_v8, %v459_v9  ;;  %v330_v12 = vpop.f32.mrf.mxu0  ;;  %v392_v13 = vpop.f32.mrf.mxu1 }
  0xda   : > { %v403_v16 = vmax.f32 %v330_v12, %v392_v13 }
  0xdb   : > { %v542_v14 = vmax.f32 %v472_v11, %v529_v10 }
  0xdd   : > { %v554_v15 = vadd.f32 %v959_v30, %v542_v14 }
  0xdf   : > { %v562_v17 = vmax.f32 %v554_v15, 0.0 }
  0xe0   : > { %v462_v18 = vpop.f32.mrf.mxu2  ;;  %v532_v19 = vpop.f32.mrf.mxu3 }
  0xe1   : > { %570 = vst [vmem:[%s966_s18 + $0x28] sm:$0xff] %v562_v17  ;;  %v473_v20 = vmax.f32 %v403_v16, %v462_v18  ;;  %v332_v22 = vpop.f32.mrf.mxu0  ;;  %v394_v23 = vpop.f32.mrf.mxu1 }
  0xe2   : > { %v404_v26 = vmax.f32 %v332_v22, %v394_v23 }
  0xe3   : > { %v543_v21 = vmax.f32 %v473_v20, %v532_v19 }
  0xe5   : > { %v555_v24 = vadd.f32 %v959_v30, %v543_v21 }
  0xe7   : > { %v563_v25 = vmax.f32 %v555_v24, 0.0 }
  0xe8   : > { %v464_v27 = vpop.f32.mrf.mxu2  ;;  %v534_v29 = vpop.f32.mrf.mxu3 }
  0xe9   : > { %571 = vst [vmem:[%s966_s18 + $0x30] sm:$0xff] %v563_v25  ;;  %v474_v28 = vmax.f32 %v404_v26, %v464_v27 }
  0xeb   : > { %v544_v31 = vmax.f32 %v474_v28, %v534_v29 }
  0xed   : > { %v556_v32 = vadd.f32 %v959_v30, %v544_v31 }
  0xef   : > { %v564_v33 = vmax.f32 %v556_v32, 0.0 }
  0xf1   : > { %572 = vst [vmem:[%s966_s18 + $0x38] sm:$0xff] %v564_v33 }
  0xf2 PF: > { %s13_s14 = sadd.s32 1, %s864_s14   ;;  %s996_s12 = smov %s860_s13 }
  0xf3   : > { %p10_p5 = scmp.ge.s32.totalorder %s13_s14, 4   ;;  %s997_s13 = smov %s999_s15 }
  0xf5   :  { %12 = sbr.rel (!%p10_p5) target bundleno = 2 (0x2), region = 65 }

</bundles_post_ra>
